<compile_context>
chip_gen: v6e
topology: v6e:2x2x1
jax: 0.10.0
libtpu: 0.0.40
codegen_flags: <defaults>
</compile_context>

<pallas_src>
import jax
import jax.numpy as jnp
from jax.experimental import pallas as pl
from jax.experimental.pallas import tpu as pltpu


def _round_up(x: int, m: int) -> int:
    return (x + m - 1) // m * m


def _pick_tile(dim: int, cap: int, align: int):
    """Largest tile <= cap that is a multiple of `align` and divides the
    align-padded dim (so the grid needs no padding beyond alignment)."""
    dp = _round_up(dim, align)
    if dp <= cap:
        return dp, dp
    t = (cap // align) * align
    while t > align:
        if dp % t == 0:
            break
        t -= align
    return t, dp


def _linear_kernel_f32_out(x_ref, w_ref, b_ref, o_ref):
    # x_ref: (tm, tk)  w_ref: (tk, tn)  b_ref: (1, tn)  o_ref: (tm, tn) f32
    # Output block is resident across the K axis (index_map ignores k), so we
    # accumulate straight into it: no scratch, no finalize copy.
    k = pl.program_id(2)
    partial = jnp.dot(x_ref[...], w_ref[...], preferred_element_type=jnp.float32)

    @pl.when(k == 0)
    def _():
        o_ref[...] = partial + b_ref[...]          # bias added exactly once

    @pl.when(k > 0)
    def _():
        o_ref[...] += partial


def _linear_kernel_acc(x_ref, w_ref, b_ref, o_ref, acc_ref):
    # Low-precision-output path: keep an f32 accumulator, cast once at the end.
    k = pl.program_id(2)
    partial = jnp.dot(x_ref[...], w_ref[...], preferred_element_type=jnp.float32)

    @pl.when(k == 0)
    def _():
        acc_ref[...] = partial + b_ref[...]

    @pl.when(k > 0)
    def _():
        acc_ref[...] += partial

    @pl.when(k == pl.num_programs(2) - 1)
    def _():
        o_ref[...] = acc_ref[...].astype(o_ref.dtype)


def linear_pallas(x, weight, bias, *, tm_cap=1024, tn_cap=512, tk_cap=512,
                  mxu_dtype=None):
    """y = x @ weight.T + bias  (torch.nn.Linear semantics), Pallas path.

    x:      (B, input_size)
    weight: (output_size, input_size)
    bias:   (output_size,)
    mxu_dtype: optionally cast x/weight to this dtype (e.g. jnp.bfloat16) for
               the MXU; accumulation stays f32 and the output keeps x.dtype.
    """
    B, IN = x.shape
    OUT, IN_w = weight.shape
    assert IN == IN_w, "input feature dim mismatch"

    out_dtype = x.dtype
    compute_dtype = mxu_dtype if mxu_dtype is not None else x.dtype

    # ---- Tile selection -----------------------------------------------------
    # M: one tile covers the whole (8-aligned) batch whenever it fits the cap,
    #    so the weight is fetched from HBM exactly once.
    # K/N: 256-aligned (MXU width on v6e/v7x) when the dim is large enough,
    #    otherwise the minimum legal 128 lanes; tiles always divide the padded
    #    dim so no extra padding is materialized.
    kalign = 256 if IN >= 256 else 128
    nalign = 256 if OUT >= 256 else 128
    tm, Mp = _pick_tile(B, tm_cap, 8)
    tk, Kp = _pick_tile(IN, tk_cap, kalign)
    tn, Np = _pick_tile(OUT, tn_cap, nalign)

    # v7x: with a full-batch M tile, keep >=2 parallel N tiles when possible so
    # the second TensorCore is not idle.
    if Mp // tm == 1 and Np // tn == 1 and tn % (2 * nalign) == 0:
        tn //= 2

    # ---- Operand preparation (layout + minimal padding) ---------------------
    xp = x.astype(compute_dtype)
    if Mp != B or Kp != IN:
        # K padding must be zeros for correctness; only emitted when ragged.
        xp = jnp.pad(xp, ((0, Mp - B), (0, Kp - IN)))

    # One-time canonical (K, N) weight layout: the in-kernel matmul needs no
    # per-step transpose.  For a real parameter this is hoisted out of the
    # jitted forward (weight is constant).
    wt = weight.T.astype(compute_dtype)
    if Kp != IN or Np != OUT:
        wt = jnp.pad(wt, ((0, Kp - IN), (0, Np - OUT)))

    bp = bias.astype(jnp.float32).reshape(1, OUT)
    if Np != OUT:
        bp = jnp.pad(bp, ((0, 0), (0, Np - OUT)))

    grid = (Mp // tm, Np // tn, Kp // tk)

    # ---- Kernel variant & VMEM budget ---------------------------------------
    if out_dtype == jnp.float32:
        kernel = _linear_kernel_f32_out
        scratch = []
        acc_bytes = 0
    else:
        kernel = _linear_kernel_acc
        scratch = [pltpu.VMEM((tm, tn), jnp.float32)]
        acc_bytes = tm * tn * 4

    in_isz = jnp.dtype(compute_dtype).itemsize
    out_isz = jnp.dtype(out_dtype).itemsize
    vmem_need = (2 * (tm * tk + tk * tn) * in_isz        # double-buffered x, W
                 + 2 * tm * tn * out_isz                 # double-buffered out
                 + 2 * 2 * tn * 4                        # bias tiles
                 + acc_bytes)
    vmem_limit = int(min(max(vmem_need * 3 // 2 + (2 << 20), 16 << 20), 56 << 20))

    cost = pl.CostEstimate(
        flops=2 * Mp * Np * Kp,
        transcendentals=0,
        bytes_accessed=(Mp * Kp + Kp * Np) * in_isz + Mp * Np * out_isz + Np * 4)

    out = pl.pallas_call(
        kernel,
        out_shape=jax.ShapeDtypeStruct((Mp, Np), out_dtype),
        grid_spec=pltpu.PrefetchScalarGridSpec(
            num_scalar_prefetch=0,
            grid=grid,
            in_specs=[
                pl.BlockSpec((tm, tk), lambda i, j, k: (i, k)),   # x tile
                pl.BlockSpec((tk, tn), lambda i, j, k: (k, j)),   # W^T tile (K,N)
                pl.BlockSpec((1, tn), lambda i, j, k: (0, j)),    # bias tile
            ],
            out_specs=pl.BlockSpec((tm, tn), lambda i, j, k: (i, j)),
            scratch_shapes=scratch,
        ),
        compiler_params=pltpu.CompilerParams(
            dimension_semantics=("parallel", "parallel", "arbitrary"),
            vmem_limit_bytes=vmem_limit),
        cost_estimate=cost,
    )(xp, wt, bp)

    if Mp != B or Np != OUT:
        out = out[:B, :OUT]
    return out


def linear(x, weight, bias, *, pallas_threshold=1 << 20):
    """Dispatcher: tiny problems go to plain XLA (fused GEMM+bias beats any
    kernel-launch overhead); larger ones use the Pallas kernel."""
    B, IN = x.shape
    OUT = weight.shape[0]
    if B * IN * OUT < pallas_threshold:
        return x @ weight.T + bias
    return linear_pallas(x, weight, bias)


if __name__ == "__main__":
    key = jax.random.PRNGKey(0)
    ks = jax.random.split(key, 6)

    # --- Shapes consistent with the module's test usage: batch=8, in=32, out=16.
    B, INPUT_SIZE, OUTPUT_SIZE = 8, 32, 16
    bound = 1.0 / (INPUT_SIZE ** 0.5)
    x = jax.random.normal(ks[0], (B, INPUT_SIZE), dtype=jnp.float32)
    weight = jax.random.uniform(ks[1], (OUTPUT_SIZE, INPUT_SIZE),
                                minval=-bound, maxval=bound, dtype=jnp.float32)
    bias = jax.random.uniform(ks[2], (OUTPUT_SIZE,),
                              minval=-bound, maxval=bound, dtype=jnp.float32)

    out = linear_pallas(x, weight, bias)          # exercise the Pallas path
    jax.block_until_ready(out)
    ref = x @ weight.T + bias
    assert out.shape == ref.shape
    assert jnp.allclose(out, ref, atol=1e-5, rtol=1e-5), "small-shape mismatch"

    # --- Multi-tile case: exercises K accumulation (Kp/tk=2), N padding,
    #     multiple parallel N tiles and the direct-into-output accumulation.
    B2, IN2, OUT2 = 256, 1024, 640
    bound2 = 1.0 / (IN2 ** 0.5)
    x2 = jax.random.normal(ks[3], (B2, IN2), dtype=jnp.float32)
    w2 = jax.random.uniform(ks[4], (OUT2, IN2),
                            minval=-bound2, maxval=bound2, dtype=jnp.float32)
    b2 = jax.random.uniform(ks[5], (OUT2,),
                            minval=-bound2, maxval=bound2, dtype=jnp.float32)

    out2 = linear_pallas(x2, w2, b2)
    jax.block_until_ready(out2)
    ref2 = x2 @ w2.T + b2
    assert jnp.allclose(out2, ref2, atol=1e-3, rtol=1e-3), "tiled-shape mismatch"

    # --- Optional bf16 MXU-input path (f32 accumulation), looser tolerance.
    out3 = linear_pallas(x2, w2, b2, mxu_dtype=jnp.bfloat16)
    jax.block_until_ready(out3)
    assert jnp.allclose(out3, ref2, atol=5e-2, rtol=5e-2), "bf16 path mismatch"

    print("KERNEL_OK")
</pallas_src>

<mosaic_0001>
module attributes {stable_mosaic.version = 11 : i64} {
  func.func @_linear_kernel_f32_out(%arg0: i32, %arg1: i32, %arg2: i32, %arg3: memref<8x128xf32, #tpu.memory_space<vmem>>, %arg4: memref<128x128xf32, #tpu.memory_space<vmem>>, %arg5: memref<1x128xf32, #tpu.memory_space<vmem>>, %arg6: memref<8x128xf32, #tpu.memory_space<vmem>>) attributes {dimension_semantics = [#tpu.dimension_semantics<parallel>, #tpu.dimension_semantics<parallel>, #tpu.dimension_semantics<arbitrary>], iteration_bounds = array<i64: 1, 1, 1>, scalar_prefetch = 0 : i64, scratch_operands = 0 : i64, tpu.core_type = #tpu.core_type<tc>, window_params = [{transform_indices = @transform_0, window_bounds = array<i64: 8, 128>}, {transform_indices = @transform_1, window_bounds = array<i64: 128, 128>}, {transform_indices = @transform_2, window_bounds = array<i64: 1, 128>}, {transform_indices = @transform_3, window_bounds = array<i64: 8, 128>}]} {
    %c0 = arith.constant 0 : index
    %c0_0 = arith.constant 0 : index
    %0 = vector.load %arg3[%c0, %c0_0] : memref<8x128xf32, #tpu.memory_space<vmem>>, vector<8x128xf32>
    %c0_1 = arith.constant 0 : index
    %c0_2 = arith.constant 0 : index
    %1 = vector.load %arg4[%c0_1, %c0_2] : memref<128x128xf32, #tpu.memory_space<vmem>>, vector<128x128xf32>
    %cst = arith.constant dense<0.000000e+00> : vector<8x128xf32>
    %2 = tpu.matmul %0, %1, %cst {dimension_numbers = #tpu.dot_dimension_numbers<[1], [0], [0], [1], [0, 0, 1, 1], [], []>} : vector<8x128xf32>, vector<128x128xf32>, vector<8x128xf32> -> vector<8x128xf32>
    %c0_i32 = arith.constant 0 : i32
    %3 = arith.cmpi eq, %arg2, %c0_i32 : i32
    %4 = arith.extui %3 : i1 to i32
    %c0_i32_3 = arith.constant 0 : i32
    %5 = arith.cmpi ne, %4, %c0_i32_3 : i32
    scf.if %5 {
      %c0_6 = arith.constant 0 : index
      %c0_7 = arith.constant 0 : index
      %9 = vector.load %arg5[%c0_6, %c0_7] : memref<1x128xf32, #tpu.memory_space<vmem>>, vector<1x128xf32>
      %10 = vector.broadcast %9 : vector<1x128xf32> to vector<8x128xf32>
      %11 = arith.addf %2, %10 : vector<8x128xf32>
      %c0_8 = arith.constant 0 : index
      %c0_9 = arith.constant 0 : index
      %12 = vector.load %arg6[%c0_8, %c0_9] : memref<8x128xf32, #tpu.memory_space<vmem>>, vector<8x128xf32>
      tpu.vector_store %arg6[%c0_8, %c0_9], %11 {strides = array<i32>} : memref<8x128xf32, #tpu.memory_space<vmem>>, vector<8x128xf32>,
    } else {
    }
    %c0_i32_4 = arith.constant 0 : i32
    %6 = arith.cmpi sgt, %arg2, %c0_i32_4 : i32
    %7 = arith.extui %6 : i1 to i32
    %c0_i32_5 = arith.constant 0 : i32
    %8 = arith.cmpi ne, %7, %c0_i32_5 : i32
    scf.if %8 {
      %c0_6 = arith.constant 0 : index
      %c0_7 = arith.constant 0 : index
      %9 = vector.load %arg6[%c0_6, %c0_7] : memref<8x128xf32, #tpu.memory_space<vmem>>, vector<8x128xf32>
      %10 = arith.addf %9, %2 : vector<8x128xf32>
      %c0_8 = arith.constant 0 : index
      %c0_9 = arith.constant 0 : index
      %11 = vector.load %arg6[%c0_8, %c0_9] : memref<8x128xf32, #tpu.memory_space<vmem>>, vector<8x128xf32>
      tpu.vector_store %arg6[%c0_8, %c0_9], %10 {strides = array<i32>} : memref<8x128xf32, #tpu.memory_space<vmem>>, vector<8x128xf32>,
    } else {
    }
    return
  }
  func.func @transform_0(%arg0: i32, %arg1: i32, %arg2: i32) -> (i32, i32) {
    %c0_i32 = arith.constant 0 : i32
    return %arg0, %arg2 : i32, i32
  }
  func.func @transform_1(%arg0: i32, %arg1: i32, %arg2: i32) -> (i32, i32) {
    %c0_i32 = arith.constant 0 : i32
    return %arg2, %arg1 : i32, i32
  }
  func.func @transform_2(%arg0: i32, %arg1: i32, %arg2: i32) -> (i32, i32) {
    %c0_i32 = arith.constant 0 : i32
    %c0_i32_0 = arith.constant 0 : i32
    return %c0_i32, %arg1 : i32, i32
  }
  func.func @transform_3(%arg0: i32, %arg1: i32, %arg2: i32) -> (i32, i32) {
    %c0_i32 = arith.constant 0 : i32
    return %arg0, %arg1 : i32, i32
  }
}

</mosaic_0001>

<bundles_post_ra>
// kernel: tpu_custom_call.1
= control target key start
LH: loop header
LB: loop body
LE: loop exit
PB: predicated region body
PF: predicated region fallthrough
CT: control target
= control target key end

     0   :  { %8 = vsyncpa [#allocation3], 0  ;;  %s329_s0 = inlined_call_operand.hbm [shape: f32[8,128], index: 0, kind: input, shape index: {}]   ;;  %s330_s1 = inlined_call_operand.hbm [shape: f32[128,128], index: 1, kind: input, shape index: {}]   ;;  %s331_s2 = inlined_call_operand.vmem [shape: f32[1,128], index: 2, kind: input, shape index: {}]   ;;  %s332_s3 = inlined_call_operand.hbm [shape: f32[8,128], index: 3, kind: output, shape index: {}]  }
   0x1   :  { %9 = vsyncpa [#allocation6], 0 }
   0x2   :  { %10 = vsyncpa [#allocation4], 0  ;;  %s290_s12 = smov [#allocation2]   ;;  %s291_s14 = smov [#allocation5]  }
   0x3   :  { %s17_s13 = sshll.u32 %s290_s12, 4  ;;  %s26_s15 = sshll.u32 %s291_s14, 4  ;;  %s18_s13 = int_to_ptr.vmem [resolvable:$true] %s17_s13  ;;  %s27_s15 = int_to_ptr.vmem [resolvable:$true] %s26_s15 }
   0x4   :  { %s232_s16 = scalar_lea.vmem %s18_s13, 128  ;;  %p237_p1 = scmp.lt.s32.totalorder %s18_s13, %s18_s13 }
   0x5   :  { %p233_p0 = scmp.ne.s32.totalorder %s18_s13, %s232_s16  ;;  %p238_p2 = scmp.lt.s32.totalorder %s232_s16, %s232_s16 }
   0x7   :  { %p239_p3 = por %p238_p2, %p237_p1 }
   0x9   :  { %p240_p4 = pnand %p239_p3, %p233_p0 }
   0xb   :  { %243 = shalt.err (!%p240_p4)
}
   0xc   :  { %20 = dma.hbm_to_vmem [thread:$0]  %s329_s0, 128, %s18_s13, [#allocation3]  }
   0xd   :  { %s252_s19 = scalar_lea.vmem %s27_s15, 2048  ;;  %p257_p6 = scmp.lt.s32.totalorder %s27_s15, %s27_s15 }
   0xe   :  { %p253_p5 = scmp.ne.s32.totalorder %s27_s15, %s252_s19  ;;  %p258_p7 = scmp.lt.s32.totalorder %s252_s19, %s252_s19 }
  0x10   :  { %p259_p8 = por %p258_p7, %p257_p6 }
  0x12   :  { %p260_p9 = pnand %p259_p8, %p253_p5 }
  0x14   :  { %263 = shalt.err (!%p260_p9)
}
  0x15   :  { %s292_s20 = smov 128   ;;  %s293_s21 = smov 8  }
  0x16   :  { %32 = dma.hbm_to_vmem [thread:$0]  %s330_s1, 2048, %s27_s15, [#allocation6], %s292_s20, %s292_s20, %s293_s21  }
  0x17   :  { %284 = dma.done.wait [#allocation3], 128  }
  0x18   :  { %285 = vsyncadd [#allocation3], 4294967168 }
  0x19   :  { %286 = dma.done.wait [#allocation6], 2048  }
  0x1a   :  { %287 = vsyncadd [#allocation6], 4294965248  ;;  %v294_v0 = vmov 0.0   ;;  %vm295_vm0 = vmmov 0   ;;  %v57_v1 = vld [vmem:[#allocation5 + $0x78] sm:$0xff]  ;;  %v56_v2 = vld [vmem:[#allocation5 + $0x70] sm:$0xff] }
  0x1b   :  { %182 = vmatprep.subr.mxu0 %v294_v0  ;;  %214 = vmatprep.mubr.msk.f32.mxu0 %vm295_vm0, %v294_v0  ;;  %v55_v3 = vld [vmem:[#allocation5 + $0x68] sm:$0xff]  ;;  %v54_v4 = vld [vmem:[#allocation5 + $0x60] sm:$0xff]  ;;  %v53_v5 = vld [vmem:[#allocation5 + $0x58] sm:$0xff]  ;;  %s296_s24 = smov [#allocation7]  }
  0x1c   :  { %183 = vmatpush3.msra.mxu0 %v57_v1  ;;  %v52_v6 = vld [vmem:[#allocation5 + $0x50] sm:$0xff]  ;;  %v51_v7 = vld [vmem:[#allocation5 + $0x48] sm:$0xff]  ;;  %v50_v8 = vld [vmem:[#allocation5 + $0x40] sm:$0xff]  ;;  %s154_s25 = sshll.u32 %s296_s24, 4  ;;  %s155_s25 = int_to_ptr.vmem [resolvable:$true] %s154_s25 }
  0x1d   :  { %184 = vmatprep.subr.mxu0 %v294_v0  ;;  %v49_v9 = vld [vmem:[#allocation5 + $0x38] sm:$0xff]  ;;  %v48_v10 = vld [vmem:[#allocation5 + $0x30] sm:$0xff]  ;;  %v47_v11 = vld [vmem:[#allocation5 + $0x28] sm:$0xff]  ;;  %s264_s26 = scalar_lea.vmem %s155_s25, 128  ;;  %p269_p11 = scmp.lt.s32.totalorder %s155_s25, %s155_s25 }
  0x1e   :  { %185 = vmatpush3.msra.mxu0 %v56_v2  ;;  %v46_v12 = vld [vmem:[#allocation5 + $0x20] sm:$0xff]  ;;  %v45_v13 = vld [vmem:[#allocation5 + $0x18] sm:$0xff]  ;;  %v44_v14 = vld [vmem:[#allocation5 + $0x10] sm:$0xff]  ;;  %p265_p10 = scmp.ne.s32.totalorder %s155_s25, %s264_s26  ;;  %p270_p12 = scmp.lt.s32.totalorder %s264_s26, %s264_s26 }
  0x1f   :  { %186 = vmatprep.subr.mxu0 %v294_v0  ;;  %v43_v15 = vld [vmem:[#allocation5 + $0x8] sm:$0xff]  ;;  %v42_v16 = vld [vmem:[#allocation5] sm:$0xff]  ;;  %v41_v17 = vld [vmem:[#allocation2] sm:$0xff] }
  0x20   :  { %187 = vmatpush3.msra.mxu0 %v55_v3  ;;  %v164_v18 = vld [vmem:[%s331_s2] ss:$0 sm:$0xff]  ;;  %p271_p13 = por %p270_p12, %p269_p11 }
  0x21   :  { %188 = vmatprep.subr.mxu0 %v294_v0 }
  0x22   :  { %189 = vmatpush3.msra.mxu0 %v54_v4  ;;  %p272_p0 = pnand %p271_p13, %p265_p10 }
  0x23   :  { %190 = vmatprep.subr.mxu0 %v294_v0 }
  0x24   :  { %191 = vmatpush3.msra.mxu0 %v53_v5 }
  0x25   :  { %192 = vmatprep.subr.mxu0 %v294_v0 }
  0x26   :  { %193 = vmatpush3.msra.mxu0 %v52_v6 }
  0x27   :  { %194 = vmatprep.subr.mxu0 %v294_v0 }
  0x28   :  { %195 = vmatpush3.msra.mxu0 %v51_v7 }
  0x29   :  { %196 = vmatprep.subr.mxu0 %v294_v0 }
  0x2a   :  { %197 = vmatpush3.msra.mxu0 %v50_v8 }
  0x2b   :  { %198 = vmatprep.subr.mxu0 %v294_v0 }
  0x2c   :  { %199 = vmatpush3.msra.mxu0 %v49_v9 }
  0x2d   :  { %200 = vmatprep.subr.mxu0 %v294_v0 }
  0x2e   :  { %201 = vmatpush3.msra.mxu0 %v48_v10 }
  0x2f   :  { %202 = vmatprep.subr.mxu0 %v294_v0 }
  0x30   :  { %203 = vmatpush3.msra.mxu0 %v47_v11 }
  0x31   :  { %204 = vmatprep.subr.mxu0 %v294_v0 }
  0x32   :  { %205 = vmatpush3.msra.mxu0 %v46_v12 }
  0x33   :  { %206 = vmatprep.subr.mxu0 %v294_v0 }
  0x34   :  { %207 = vmatpush3.msra.mxu0 %v45_v13 }
  0x35   :  { %208 = vmatprep.subr.mxu0 %v294_v0 }
  0x36   :  { %209 = vmatpush3.msra.mxu0 %v44_v14 }
  0x37   :  { %210 = vmatprep.subr.mxu0 %v294_v0 }
  0x38   :  { %211 = vmatpush3.msra.mxu0 %v43_v15 }
  0x39   :  { %212 = vmatprep.subr.mxu0 %v294_v0 }
  0x3a   :  { %213 = vmatpush3.msra.mxu0 %v42_v16 }
  0x3b   :  { %215 = vmatmul.mubr.f32.vlgmr.msra.gmra.mxu0 %v41_v17 }
  0xfb   :  { %v124_v19 = vpop.f32.mrf.mxu0 }
  0xfc   :  { %v139_v20 = vadd.f32 %v164_v18, %v124_v19 }
  0xfd   :  { %v216_v21 = vpop.f32.mrf.mxu0 }
  0xfe   :  { %140 = vst [vmem:[#allocation7] sm:$0xff] %v139_v20 }
  0xff   :  { %275 = shalt.err (!%p272_p0)
}
 0x100   :  { %157 = dma.vmem_to_hbm [thread:$0]  %s155_s25, 128, %s332_s3, [#allocation4]  }
 0x101   :  { %288 = dma.done.wait [#allocation4], 128  }
 0x102   :  { %289 = vsyncadd [#allocation4], 4294967168 }
 0x103   :  { %161 = vsyncpa [#allocation3], 1 }
 0x104   :  { %162 = vsyncpa [#allocation6], 1 }
 0x105   :  { %163 = vsyncpa [#allocation4], 1 }

</bundles_post_ra>
